<compile_context>
chip_gen: v7x
topology: tpu7x:2x2x1
jax: 0.10.0
libtpu: 0.0.40
codegen_flags: <defaults>
</compile_context>

<pallas_src>
import math

import jax
import jax.numpy as jnp
from jax.experimental import pallas as pl
from jax.experimental.pallas import tpu as pltpu

# ---------------- problem sizes ----------------
B = 2             # batch
C = 4             # channels
H = W = 16        # spatial
HW = H * W        # 256 -> lane axis
BC = B * C        # 8   -> full sublane axis
HID = 32          # hidden width of the synthetic denoiser
BHID = B * HID    # 64
TEMB = 16         # sinusoidal time-embedding dim
D1 = 8            # c1 dim
D2 = 8            # c2 dim
DC = TEMB + D1 + D2   # 32 total conditioning dim
SMALLW = 2 + 2 * DC   # packed small-input width: [sr, nr, wc_row, cond_row]
T_STEPS = 1000
BETA = (1e-4, 0.02)


# ---------------- Pallas kernel ----------------
def diffusion_trainer_kernel(smalls_ref, x0_ref, eps_ref, w1_ref, w2_ref, loss_ref):
    # Unpack the consolidated small-input slab with static slices (no copies
    # of consequence at this size).
    sr = smalls_ref[:, 0:1]                    # (BC, 1) per-row signal rate
    nr = smalls_ref[:, 1:2]                    # (BC, 1) per-row noise rate
    wc = smalls_ref[:, 2:2 + DC]               # (BC, DC) row b*C+c -> wc[c]
    cond = smalls_ref[:, 2 + DC:SMALLW]        # (BC, DC) row b*C+c -> cond[b]

    # Forward diffusion mixing for the whole batch in one broadcast FMA.
    eps = eps_ref[...]                                             # (BC, HW)
    x_t = sr * x0_ref[...] + nr * eps                              # (BC, HW)

    # Batched synthetic conditional denoiser (block-diagonal weights):
    # one MXU engagement per layer for the entire batch.
    # (Cast operands to bf16 here once HID/HW grow; keep f32 accumulation.)
    h = jnp.maximum(
        jnp.dot(w1_ref[...], x_t, preferred_element_type=jnp.float32), 0.0)   # (BHID, HW)

    # Per-sample conditioning bias: one VPU multiply over (BC, DC) + one lane
    # (XLU) reduction. Kept in-kernel on purpose (VPU/XLU slots have slack).
    bias = jnp.sum(wc * cond, axis=1, keepdims=True)                            # (BC, 1)

    eps_theta = jnp.dot(w2_ref[...], h, preferred_element_type=jnp.float32) + bias  # (BC, HW)

    # elementwise MSE (reduction='none') -> dense (8, 256) unmasked store
    diff = eps_theta - eps
    loss_ref[...] = diff * diff


# ---------------- glue (plain JAX) ----------------
def timestep_embedding(t, dim):
    half = dim // 2
    freqs = jnp.exp(-math.log(10000.0) * jnp.arange(half, dtype=jnp.float32) / half)
    args = t.astype(jnp.float32)[:, None] * freqs[None, :]
    return jnp.concatenate([jnp.sin(args), jnp.cos(args)], axis=-1)


def make_schedule():
    beta_t = jnp.linspace(BETA[0], BETA[1], T_STEPS, dtype=jnp.float32)
    alpha_t = 1.0 - beta_t
    alpha_t_bar = jnp.cumprod(alpha_t, axis=0)
    signal_rate = jnp.sqrt(alpha_t_bar)
    noise_rate = jnp.sqrt(1.0 - alpha_t_bar)
    return signal_rate, noise_rate


def make_trainer(w1, w2, wc, signal_rate, noise_rate):
    """Builds the trainer forward. Constant layout plumbing is done ONCE here
    (not per call) and closed over by the jitted forward."""
    eye_b = jnp.eye(B, dtype=jnp.float32)
    w1_bd = jnp.kron(eye_b, w1)                  # (BHID, BC)  block-diag weight 1
    w2_bd = jnp.kron(eye_b, w2)                  # (BC, BHID)  block-diag weight 2
    wc_rows = jnp.tile(wc, (B, 1))               # (BC, DC): row b*C+c -> wc[c]

    vmem = pl.BlockSpec(memory_space=pltpu.MemorySpace.VMEM)
    kern = pl.pallas_call(
        diffusion_trainer_kernel,
        out_shape=jax.ShapeDtypeStruct((BC, HW), jnp.float32),
        in_specs=[vmem] * 5,                     # whole arrays in VMEM, no grid
        out_specs=vmem,
    )

    @jax.jit
    def forward(x0_nchw, t, epsilon_nchw, c1, c2):
        # extract(signal_rate, t, shape) / extract(noise_rate, t, shape)
        sr_b = signal_rate[t].astype(jnp.float32)                  # (B,)
        nr_b = noise_rate[t].astype(jnp.float32)                   # (B,)

        # conditioning vector per sample: [time_emb(t), c1, c2]
        temb = timestep_embedding(t, TEMB)
        cond = jnp.concatenate([temb, c1, c2], axis=-1).astype(jnp.float32)  # (B, DC)

        # ---- layout plumbing (data-dependent part only) ----
        x0 = x0_nchw.reshape(BC, HW)             # (8, 256) lane/sublane-dense slab
        eps = epsilon_nchw.reshape(BC, HW)
        sr_rows = jnp.repeat(sr_b, C)[:, None]   # (BC, 1)
        nr_rows = jnp.repeat(nr_b, C)[:, None]   # (BC, 1)
        cond_rows = jnp.repeat(cond, C, axis=0)  # (BC, DC): row b*C+c -> cond[b]

        # consolidate all tiny inputs into one (BC, 2+2*DC) array -> one DMA
        smalls = jnp.concatenate([sr_rows, nr_rows, wc_rows, cond_rows], axis=1)

        loss = kern(smalls, x0, eps, w1_bd, w2_bd)
        return loss.reshape(B, C, H, W)

    return forward


def ref_forward(x0, sr_b, nr_b, eps, w1, w2, wc, cond):
    x_t = sr_b[:, None, None, None] * x0 + nr_b[:, None, None, None] * eps
    xt2 = x_t.reshape(B, C, HW)
    h = jnp.maximum(jnp.einsum('hc,bcs->bhs', w1, xt2), 0.0)
    bias = cond @ wc.T                                   # (B, C)
    eps_theta = jnp.einsum('ch,bhs->bcs', w2, h) + bias[:, :, None]
    loss = (eps_theta - eps.reshape(B, C, HW)) ** 2
    return loss.reshape(B, C, H, W)


if __name__ == "__main__":
    key = jax.random.PRNGKey(0)
    k_x, k_t, k_eps, k_c1, k_c2, k_w1, k_w2, k_wc = jax.random.split(key, 8)

    # inputs
    x0 = jax.random.normal(k_x, (B, C, H, W), dtype=jnp.float32)      # NCHW
    c1 = jax.random.normal(k_c1, (B, D1), dtype=jnp.float32)
    c2 = jax.random.normal(k_c2, (B, D2), dtype=jnp.float32)

    # randomness of the trainer forward (deterministic via fixed keys)
    t = jax.random.randint(k_t, (B,), 0, T_STEPS)
    epsilon = jax.random.normal(k_eps, (B, C, H, W), dtype=jnp.float32)

    # diffusion schedule buffers
    signal_rate, noise_rate = make_schedule()

    # deterministic synthetic denoiser parameters
    w1 = jax.random.normal(k_w1, (HID, C), dtype=jnp.float32) * 0.1
    w2 = jax.random.normal(k_w2, (C, HID), dtype=jnp.float32) * 0.1
    wc = jax.random.normal(k_wc, (C, DC), dtype=jnp.float32) * 0.1

    # build the jitted trainer (constants hoisted once)
    trainer = make_trainer(w1, w2, wc, signal_rate, noise_rate)

    loss = trainer(x0, t, epsilon, c1, c2)
    loss = jax.block_until_ready(loss)

    # reference check
    sr_b = signal_rate[t].astype(jnp.float32)
    nr_b = noise_rate[t].astype(jnp.float32)
    temb = timestep_embedding(t, TEMB)
    cond = jnp.concatenate([temb, c1, c2], axis=-1).astype(jnp.float32)
    ref = ref_forward(x0, sr_b, nr_b, epsilon, w1, w2, wc, cond)

    assert loss.shape == (B, C, H, W)
    assert jnp.allclose(loss, ref, rtol=1e-4, atol=1e-4)

    print("KERNEL_OK")
</pallas_src>

<mosaic_0001>
module attributes {stable_mosaic.version = 11 : i64} {
  func.func @diffusion_trainer_kernel(%arg0: memref<8x66xf32, #tpu.memory_space<vmem>>, %arg1: memref<8x256xf32, #tpu.memory_space<vmem>>, %arg2: memref<8x256xf32, #tpu.memory_space<vmem>>, %arg3: memref<64x8xf32, #tpu.memory_space<vmem>>, %arg4: memref<8x64xf32, #tpu.memory_space<vmem>>, %arg5: memref<8x256xf32, #tpu.memory_space<vmem>>) attributes {dimension_semantics = [], scalar_prefetch = 0 : i64, scratch_operands = 0 : i64, tpu.core_type = #tpu.core_type<tc>} {
    %c0 = arith.constant 0 : index
    %c0_0 = arith.constant 0 : index
    %0 = vector.load %arg0[%c0, %c0_0] : memref<8x66xf32, #tpu.memory_space<vmem>>, vector<8x1xf32>
    %c0_1 = arith.constant 0 : index
    %c1 = arith.constant 1 : index
    %1 = vector.load %arg0[%c0_1, %c1] : memref<8x66xf32, #tpu.memory_space<vmem>>, vector<8x1xf32>
    %c0_2 = arith.constant 0 : index
    %c2 = arith.constant 2 : index
    %2 = vector.load %arg0[%c0_2, %c2] : memref<8x66xf32, #tpu.memory_space<vmem>>, vector<8x32xf32>
    %c0_3 = arith.constant 0 : index
    %c34 = arith.constant 34 : index
    %3 = vector.load %arg0[%c0_3, %c34] : memref<8x66xf32, #tpu.memory_space<vmem>>, vector<8x32xf32>
    %c0_4 = arith.constant 0 : index
    %c0_5 = arith.constant 0 : index
    %4 = vector.load %arg2[%c0_4, %c0_5] : memref<8x256xf32, #tpu.memory_space<vmem>>, vector<8x256xf32>
    %c0_6 = arith.constant 0 : index
    %c0_7 = arith.constant 0 : index
    %5 = vector.load %arg1[%c0_6, %c0_7] : memref<8x256xf32, #tpu.memory_space<vmem>>, vector<8x256xf32>
    %6 = vector.broadcast %0 : vector<8x1xf32> to vector<8x256xf32>
    %7 = arith.mulf %6, %5 : vector<8x256xf32>
    %8 = vector.broadcast %1 : vector<8x1xf32> to vector<8x256xf32>
    %9 = arith.mulf %8, %4 : vector<8x256xf32>
    %10 = arith.addf %7, %9 : vector<8x256xf32>
    %c0_8 = arith.constant 0 : index
    %c0_9 = arith.constant 0 : index
    %11 = vector.load %arg3[%c0_8, %c0_9] : memref<64x8xf32, #tpu.memory_space<vmem>>, vector<64x8xf32>
    %cst = arith.constant dense<0.000000e+00> : vector<64x256xf32>
    %12 = tpu.matmul %11, %10, %cst {dimension_numbers = #tpu.dot_dimension_numbers<[1], [0], [0], [1], [0, 0, 1, 1], [], []>} : vector<64x8xf32>, vector<8x256xf32>, vector<64x256xf32> -> vector<64x256xf32>
    %cst_10 = arith.constant 0.000000e+00 : f32
    %13 = vector.broadcast %cst_10 : f32 to vector<64x256xf32>
    %14 = arith.maximumf %12, %13 : vector<64x256xf32>
    %15 = arith.mulf %2, %3 : vector<8x32xf32>
    %cst_11 = arith.constant dense<0.000000e+00> : vector<8xf32>
    %16 = vector.multi_reduction <add>, %15, %cst_11 [1] : vector<8x32xf32> to vector<8xf32>
    %17 = vector.shape_cast %16 : vector<8xf32> to vector<8x1xf32>
    %c0_12 = arith.constant 0 : index
    %c0_13 = arith.constant 0 : index
    %18 = vector.load %arg4[%c0_12, %c0_13] : memref<8x64xf32, #tpu.memory_space<vmem>>, vector<8x64xf32>
    %cst_14 = arith.constant dense<0.000000e+00> : vector<8x256xf32>
    %19 = tpu.matmul %18, %14, %cst_14 {dimension_numbers = #tpu.dot_dimension_numbers<[1], [0], [0], [1], [0, 0, 1, 1], [], []>} : vector<8x64xf32>, vector<64x256xf32>, vector<8x256xf32> -> vector<8x256xf32>
    %20 = vector.broadcast %17 : vector<8x1xf32> to vector<8x256xf32>
    %21 = arith.addf %19, %20 : vector<8x256xf32>
    %22 = arith.subf %21, %4 : vector<8x256xf32>
    %23 = arith.mulf %22, %22 : vector<8x256xf32>
    %c0_15 = arith.constant 0 : index
    %c0_16 = arith.constant 0 : index
    %24 = vector.load %arg5[%c0_15, %c0_16] : memref<8x256xf32, #tpu.memory_space<vmem>>, vector<8x256xf32>
    tpu.vector_store %arg5[%c0_15, %c0_16], %23 {strides = array<i32>} : memref<8x256xf32, #tpu.memory_space<vmem>>, vector<8x256xf32>,
    return
  }
}

</mosaic_0001>

<bundles_post_ra>
// kernel: forward.1
= control target key start
LH: loop header
LB: loop body
LE: loop exit
PB: predicated region body
PF: predicated region fallthrough
CT: control target
= control target key end

     0   :  { %v332_v0 = vmov 0   ;;  %v333_v2 = vmov 1   ;;  %v334_v3 = vmov 0.0   ;;  %s335_s20 = smov 96   ;;  %vm48_vm0 = vcmask 64512   ;;  %s336_s13 = smov 126   ;;  %s431_s0 = inlined_call_operand.vmem [shape: f32[8,66], index: 0, kind: input, shape index: {}]   ;;  %s432_s1 = inlined_call_operand.vmem [shape: f32[8,256], index: 1, kind: input, shape index: {}]   ;;  %s433_s2 = inlined_call_operand.vmem [shape: f32[8,256], index: 2, kind: input, shape index: {}]   ;;  %s434_s3 = inlined_call_operand.vmem [shape: f32[64,8], index: 3, kind: input, shape index: {}]   ;;  %s435_s4 = inlined_call_operand.vmem [shape: f32[8,64], index: 4, kind: input, shape index: {}]   ;;  %s436_s5 = inlined_call_operand.vmem [shape: f32[8,256], index: 5, kind: output, shape index: {}]  }
   0x1   :  { %330 = vset.pattern.permute.xlu0 %v332_v0  ;;  %v20_v1 = vld [vmem:[%s431_s0] sm:$0xff]  ;;  %137 = vmatprep.mubr.f32.mxu0 %v334_v3  ;;  %v24_v6 = vld [vmem:[%s432_s1 + $0x8] sm:$0xff]  ;;  %v42_v18 = vld [vmem:[%s434_s3 + $0x10] sm:$0xff]  ;;  %vm210_vm1 = vcmask 261120   ;;  %vm215_vm2 = vcmask 523264  }
   0x2   :  { %27 = vperm.xlu0 %330, %v20_v1   ;;  %283 = vmatprep.mubr.f32.mxu1 %v334_v3  ;;  %v23_v5 = vld [vmem:[%s432_s1] sm:$0xff]  ;;  %v384_v8 = vld [vmem:[%s433_s2 + $0x8] sm:$0xff]  ;;  %v43_v19 = vld [vmem:[%s434_s3 + $0x18] sm:$0xff] }
   0x3   :  { %202 = vrot.lane.b32.xlu1 %v20_v1, %s335_s20  ;;  %v379_v7 = vld [vmem:[%s433_s2] sm:$0xff]  ;;  %v41_v17 = vld [vmem:[%s434_s3 + $0x8] sm:$0xff]  ;;  %v46_v24 = vld [vmem:[%s434_s3 + $0x30] sm:$0xff] }
   0x4   :  { %v40_v16 = vld [vmem:[%s434_s3] sm:$0xff]  ;;  %v45_v23 = vld [vmem:[%s434_s3 + $0x28] sm:$0xff]  ;;  %v47_v25 = vld [vmem:[%s434_s3 + $0x38] sm:$0xff] }
   0x5   :  { %v44_v20 = vld [vmem:[%s434_s3 + $0x20] sm:$0xff] }
   0x6   :  { %331 = vset.pattern.permute.xlu0 %v333_v2 }
   0x7   :  { %33 = vperm.xlu0 %331, %v20_v1  }
  0x75   :  { %v203_v21 = vpop.permute.xlu1 %202 }
  0x76   :  { %v205_v22 = vmul.f32 %v203_v21, %v20_v1 }
  0x78   :  { %207 = vrot.lane.b32.xlu1 %v205_v22, %s336_s13 }
  0x81   :  { %v28_v4 = vpop.permute.xlu0 %27 }
  0x82   :  { %v30_v10 = vmul.f32 %v28_v4, %v23_v5  ;;  %v31_v11 = vmul.f32 %v28_v4, %v24_v6  ;;  %v214_v4 = vld [vmem:[%s435_s4] sm:$0xff] }
  0x86   :  { %v34_v9 = vpop.permute.xlu0 %33 }
  0x87   :  { %v36_v12 = vmul.f32 %v34_v9, %v379_v7  ;;  %v37_v13 = vmul.f32 %v34_v9, %v384_v8 }
  0x89   :  { %v39_v14 = vadd.f32 %v37_v13, %v31_v11  ;;  %v38_v15 = vadd.f32 %v36_v12, %v30_v10 }
  0x8b   :  { %73 = vmatprep.subr.mxu0 %v39_v14 }
  0x8c   :  { %74 = vmatpush1.msra.mxu0 %v38_v15 }
  0x8d   :  { %300 = vmatmul.mubr.msk.f32.vlgmr.msra.gmra.mrb[0].mxu0 %vm48_vm0, %v40_v16 }
  0x8e   :  { %143 = vmatprep.mubr.f32.mxu0 %v334_v3 }
  0x91   :  { %301 = vmatmul.mubr.msk.f32.gmra.mrb[2].mxu0 %vm48_vm0, %v41_v17 }
  0x92   :  { %149 = vmatprep.mubr.f32.mxu0 %v334_v3 }
  0x95   :  { %302 = vmatmul.mubr.msk.f32.gmra.mrb[4].mxu0 %vm48_vm0, %v42_v18 }
  0x96   :  { %155 = vmatprep.mubr.f32.mxu0 %v334_v3 }
  0x99   :  { %303 = vmatmul.mubr.msk.f32.gmra.mrb[6].mxu0 %vm48_vm0, %v43_v19 }
  0x9a   :  { %161 = vmatprep.mubr.f32.mxu0 %v334_v3 }
  0x9d   :  { %304 = vmatmul.mubr.msk.f32.gmra.mrb[8].mxu0 %vm48_vm0, %v44_v20 }
  0x9e   :  { %167 = vmatprep.mubr.f32.mxu0 %v334_v3 }
  0xa1   :  { %305 = vmatmul.mubr.msk.f32.gmra.mrb[10].mxu0 %vm48_vm0, %v45_v23 }
  0xa2   :  { %173 = vmatprep.mubr.f32.mxu0 %v334_v3 }
  0xa5   :  { %306 = vmatmul.mubr.msk.f32.gmra.mrb[12].mxu0 %vm48_vm0, %v46_v24 }
  0xa6   :  { %179 = vmatprep.mubr.f32.mxu0 %v334_v3 }
  0xa9   :  { %307 = vmatmul.mubr.msk.f32.gmra.mrb[14].mxu0 %vm48_vm0, %v47_v25 }
  0xea   :  { %v208_v26 = vpop.permute.xlu1 %207 }
  0xeb   :  { %v211_v27 = vsel %vm210_vm1, %v208_v26, 0.0 }
  0xec   :  { %212 = vadd.xlane.f32.xlu1 %v211_v27 }
 0x160   :  { %v139_v28 = vpop.f32.mrb[0].mxu0 }
 0x161   :  { %v141_v29 = vpop.f32.mrb[1].mxu0  ;;  %v186_v31 = vmax.f32 %v139_v28, 0.0 }
 0x162   :  { %v187_v34 = vmax.f32 %v141_v29, 0.0 }
 0x164   :  { %v145_v30 = vpop.f32.mrb[2].mxu0 }
 0x165   :  { %v188_v32 = vmax.f32 %v145_v30, 0.0  ;;  %v147_v33 = vpop.f32.mrb[3].mxu0 }
 0x166   :  { %v189_v35 = vmax.f32 %v147_v33, 0.0 }
 0x167   :  { %v311_v36 = vpack.c.bf16 %v188_v32, %v186_v31 }
 0x168   :  { %v151_v37 = vpop.f32.mrb[4].mxu0  ;;  %v309_v38 = vpack.c.bf16 %v189_v35, %v187_v34 }
 0x169   :  { %v153_v39 = vpop.f32.mrb[5].mxu0  ;;  %v190_v41 = vmax.f32 %v151_v37, 0.0 }
 0x16a   :  { %310 = vmatprep.subr.bf16.mxu1 %v309_v38  ;;  %v191_v44 = vmax.f32 %v153_v39, 0.0 }
 0x16b   :  { %312 = vmatpush1.bf16.msra.mxu1 %v311_v36 }
 0x16c   :  { %v157_v40 = vpop.f32.mrb[6].mxu0 }
 0x16d   :  { %v192_v42 = vmax.f32 %v157_v40, 0.0  ;;  %v159_v43 = vpop.f32.mrb[7].mxu0 }
 0x16e   :  { %v193_v45 = vmax.f32 %v159_v43, 0.0 }
 0x16f   :  { %v315_v46 = vpack.c.bf16 %v192_v42, %v190_v41 }
 0x170   :  { %v313_v47 = vpack.c.bf16 %v193_v45, %v191_v44  ;;  %v163_v48 = vpop.f32.mrb[8].mxu0 }
 0x171   :  { %v165_v49 = vpop.f32.mrb[9].mxu0  ;;  %v194_v51 = vmax.f32 %v163_v48, 0.0 }
 0x172   :  { %314 = vmatprep.subr.bf16.mxu1 %v313_v47  ;;  %v195_v54 = vmax.f32 %v165_v49, 0.0 }
 0x173   :  { %316 = vmatpush1.bf16.msra.mxu1 %v315_v46 }
 0x174   :  { %v169_v50 = vpop.f32.mrb[10].mxu0 }
 0x175   :  { %v196_v52 = vmax.f32 %v169_v50, 0.0  ;;  %v171_v53 = vpop.f32.mrb[11].mxu0 }
 0x176   :  { %v197_v55 = vmax.f32 %v171_v53, 0.0 }
 0x177   :  { %v319_v56 = vpack.c.bf16 %v196_v52, %v194_v51 }
 0x178   :  { %v317_v57 = vpack.c.bf16 %v197_v55, %v195_v54  ;;  %v175_v58 = vpop.f32.mrb[12].mxu0 }
 0x179   :  { %v177_v59 = vpop.f32.mrb[13].mxu0  ;;  %v198_v61 = vmax.f32 %v175_v58, 0.0  ;;  %v213_v5 = vpop.xlane.xlu1 %212 }
 0x17a   :  { %318 = vmatprep.subr.bf16.mxu1 %v317_v57  ;;  %v199_v0 = vmax.f32 %v177_v59, 0.0 }
 0x17b   :  { %320 = vmatpush1.bf16.msra.mxu1 %v319_v56 }
 0x17c   :  { %v181_v60 = vpop.f32.mrb[14].mxu0 }
 0x17d   :  { %v200_v62 = vmax.f32 %v181_v60, 0.0  ;;  %v183_v63 = vpop.f32.mrb[15].mxu0 }
 0x17e   :  { %v201_v1 = vmax.f32 %v183_v63, 0.0 }
 0x17f   :  { %v323_v2 = vpack.c.bf16 %v200_v62, %v198_v61 }
 0x180   :  { %v321_v3 = vpack.c.bf16 %v201_v1, %v199_v0 }
 0x182   :  { %322 = vmatprep.subr.bf16.mxu1 %v321_v3 }
 0x183   :  { %324 = vmatpush1.bf16.msra.mxu1 %v323_v2 }
 0x186   :  { %308 = vmatmul.mubr.msk.f32.vlgmr.msra.gmra.mrb[0].mxu1 %vm215_vm2, %v214_v4 }
 0x259   :  { %v285_v6 = vpop.f32.mrb[0].mxu1 }
 0x25a   :  { %v286_v9 = vadd.f32 %v285_v6, %v213_v5  ;;  %v287_v10 = vpop.f32.mrb[1].mxu1 }
 0x25b   :  { %v288_v11 = vadd.f32 %v287_v10, %v213_v5 }
 0x25c   :  { %v290_v12 = vsub.f32 %v286_v9, %v379_v7 }
 0x25d   :  { %v291_v13 = vsub.f32 %v288_v11, %v384_v8 }
 0x25e   :  { %v292_v14 = vmul.f32 %v290_v12, %v290_v12 }
 0x25f   :  { %v293_v15 = vmul.f32 %v291_v13, %v291_v13 }
 0x260   :  { %294 = vst [vmem:[%s436_s5] sm:$0xff] %v292_v14 }
 0x261   :  { %295 = vst [vmem:[%s436_s5 + $0x8] sm:$0xff] %v293_v15 }

</bundles_post_ra>
